<compile_context>
chip_gen: v5e
topology: v5e:2x2
jax: 0.10.0
libtpu: 0.0.40
codegen_flags: <defaults>
</compile_context>

<pallas_src>
import jax
import jax.numpy as jnp
from jax import lax
from jax.experimental import pallas as pl
from jax.experimental.pallas import tpu as pltpu


# ----------------------------------------------------------------------------
# Kernel: per-column (per-gene) z-score normalization, unbiased std.
#   x_ref:  (N_CELL, TG) f32 tile  (all rows, a lane-dense slab of genes)
#   out    = (x - mean_col) * rsqrt(var_col)
# ----------------------------------------------------------------------------
def _z_norm_kernel(x_ref, out_ref):
    x = x_ref[...]                                   # (N_CELL, TG)
    n = x.shape[0]                                   # static
    mean = jnp.mean(x, axis=0, keepdims=True)        # XLU cross-sublane reduce
    d = x - mean
    var = jnp.sum(d * d, axis=0, keepdims=True) * (1.0 / (n - 1))  # torch.std: ddof=1
    inv_std = lax.rsqrt(var)                         # EUP slot (no VPU sqrt+div)
    out_ref[...] = d * inv_std


def z_normalize_dim1(x):
    """torch_z_normalized(x, dim=1): per-column z-score over rows (unbiased std)."""
    x = jnp.asarray(x, jnp.float32)
    n_cell, n_gene = x.shape

    # Lane-dense column tile: largest multiple-of-128 divisor (cap 512),
    # else fall back to the full width as a single block.
    tg = n_gene
    for cand in (512, 384, 256, 128):
        if n_gene % cand == 0:
            tg = cand
            break

    return pl.pallas_call(
        _z_norm_kernel,
        out_shape=jax.ShapeDtypeStruct((n_cell, n_gene), jnp.float32),
        grid=(n_gene // tg,),
        in_specs=[pl.BlockSpec((n_cell, tg), lambda j: (0, j))],
        out_specs=pl.BlockSpec((n_cell, tg), lambda j: (0, j)),
        compiler_params=pltpu.CompilerParams(dimension_semantics=("parallel",)),
    )(x)


# ----------------------------------------------------------------------------
# LoadFeature: same contract as the torch nn.Module.
# ----------------------------------------------------------------------------
class LoadFeature:
    def __init__(self, cell_exprs, drug_finger):
        # one-time normalization on device (single fused Pallas kernel)
        self.cell_feat = z_normalize_dim1(cell_exprs)
        # TODO(synk): drug fingerprints are a pure pass-through in the reference
        # module (torch.from_numpy), so there is nothing to kernelize here.
        self.drug_feat = jnp.asarray(drug_finger, jnp.float32)

    def __call__(self):
        # forward(): return cached features, exactly like the torch module.
        return self.cell_feat, self.drug_feat

    forward = __call__


# ----------------------------------------------------------------------------
# Main: deterministic synthetic inputs, run forward once, verify vs pure JAX.
# ----------------------------------------------------------------------------
if __name__ == "__main__":
    N_CELL, N_GENE = 64, 256     # cell lines x gene-expression features
    N_DRUG, N_FP = 32, 128       # drugs x fingerprint bits

    key = jax.random.PRNGKey(0)
    k_expr, k_fp = jax.random.split(key)
    cell_exprs = 3.0 * jax.random.normal(k_expr, (N_CELL, N_GENE), dtype=jnp.float32) + 1.5
    drug_finger = (jax.random.uniform(k_fp, (N_DRUG, N_FP)) < 0.5).astype(jnp.float32)

    loader = LoadFeature(cell_exprs, drug_finger)
    cell_feat, drug_feat = loader()           # forward pass
    jax.block_until_ready(cell_feat)
    jax.block_until_ready(drug_feat)

    # pure-JAX reference of torch_z_normalized(x, dim=1)
    mean_ref = jnp.mean(cell_exprs, axis=0, keepdims=True)
    std_ref = jnp.std(cell_exprs, axis=0, ddof=1, keepdims=True)
    ref = (cell_exprs - mean_ref) / std_ref

    assert cell_feat.shape == (N_CELL, N_GENE)
    assert drug_feat.shape == (N_DRUG, N_FP)
    assert jnp.allclose(cell_feat, ref, atol=1e-5, rtol=1e-5)
    assert jnp.array_equal(drug_feat, drug_finger)
    assert bool(jnp.isfinite(cell_feat).all())

    print("KERNEL_OK")
</pallas_src>

<mosaic_0001>
module attributes {stable_mosaic.version = 11 : i64} {
  func.func @_z_norm_kernel(%arg0: i32, %arg1: memref<64x256xf32, #tpu.memory_space<vmem>>, %arg2: memref<64x256xf32, #tpu.memory_space<vmem>>) attributes {dimension_semantics = [#tpu.dimension_semantics<parallel>], iteration_bounds = array<i64: 1>, scalar_prefetch = 0 : i64, scratch_operands = 0 : i64, tpu.core_type = #tpu.core_type<tc>, window_params = [{transform_indices = @transform_0, window_bounds = array<i64: 64, 256>}, {transform_indices = @transform_1, window_bounds = array<i64: 64, 256>}]} {
    %c0 = arith.constant 0 : index
    %c0_0 = arith.constant 0 : index
    %0 = vector.load %arg1[%c0, %c0_0] : memref<64x256xf32, #tpu.memory_space<vmem>>, vector<64x256xf32>
    %cst = arith.constant dense<0.000000e+00> : vector<256xf32>
    %1 = vector.multi_reduction <add>, %0, %cst [0] : vector<64x256xf32> to vector<256xf32>
    %2 = vector.shape_cast %1 : vector<256xf32> to vector<1x256xf32>
    %cst_1 = arith.constant 6.400000e+01 : f32
    %3 = vector.broadcast %cst_1 : f32 to vector<1x256xf32>
    %4 = arith.divf %2, %3 : vector<1x256xf32>
    %5 = vector.broadcast %4 : vector<1x256xf32> to vector<64x256xf32>
    %6 = arith.subf %0, %5 : vector<64x256xf32>
    %7 = arith.mulf %6, %6 : vector<64x256xf32>
    %cst_2 = arith.constant dense<0.000000e+00> : vector<256xf32>
    %8 = vector.multi_reduction <add>, %7, %cst_2 [0] : vector<64x256xf32> to vector<256xf32>
    %9 = vector.shape_cast %8 : vector<256xf32> to vector<1x256xf32>
    %cst_3 = arith.constant 0.0158730168 : f32
    %10 = vector.broadcast %cst_3 : f32 to vector<1x256xf32>
    %11 = arith.mulf %9, %10 : vector<1x256xf32>
    %12 = math.rsqrt %11 : vector<1x256xf32>
    %13 = vector.broadcast %12 : vector<1x256xf32> to vector<64x256xf32>
    %14 = arith.mulf %6, %13 : vector<64x256xf32>
    %c0_4 = arith.constant 0 : index
    %c0_5 = arith.constant 0 : index
    %15 = vector.load %arg2[%c0_4, %c0_5] : memref<64x256xf32, #tpu.memory_space<vmem>>, vector<64x256xf32>
    tpu.vector_store %arg2[%c0_4, %c0_5], %14 {strides = array<i32>} : memref<64x256xf32, #tpu.memory_space<vmem>>, vector<64x256xf32>,
    return
  }
  func.func @transform_0(%arg0: i32) -> (i32, i32) {
    %c0_i32 = arith.constant 0 : i32
    %c0_i32_0 = arith.constant 0 : i32
    return %c0_i32, %arg0 : i32, i32
  }
  func.func @transform_1(%arg0: i32) -> (i32, i32) {
    %c0_i32 = arith.constant 0 : i32
    %c0_i32_0 = arith.constant 0 : i32
    return %c0_i32, %arg0 : i32, i32
  }
}

</mosaic_0001>

<bundles_post_ra>
// kernel: tpu_custom_call.1
= control target key start
LH: loop header
LB: loop body
LE: loop exit
PB: predicated region body
PF: predicated region fallthrough
CT: control target
= control target key end

     0   :  { %6 = vsyncpa [#allocation3], 0  ;;  %s377_s0 = inlined_call_operand.hbm [shape: f32[64,256], index: 0, kind: input, shape index: {}]   ;;  %s378_s1 = inlined_call_operand.hbm [shape: f32[64,256], index: 1, kind: output, shape index: {}]  }
   0x1   :  { %7 = vsyncpa [#allocation4], 0  ;;  %s12_s8 = sshll.u32 %s377_s0, 4  ;;  %s270_s9 = smov [#allocation2]   ;;  %s13_s8 = int_to_ptr.hbm [resolvable:$true] %s12_s8 }
   0x2   :  { %s14_s10 = sshll.u32 %s270_s9, 4  ;;  %s271_s11 = smov 256   ;;  %s15_s10 = int_to_ptr.vmem [resolvable:$true] %s14_s10 }
   0x3   :  { %s272_s12 = smov 16  }
   0x4   :  { %20 = dma.hbm_to_vmem [thread:$0]  %s13_s8, 2048, %s15_s10, [#allocation3], %s271_s11, %s271_s11, %s272_s12  }
   0x5   :  { %266 = dma.done.wait [#allocation3], 2048  }
   0x6   :  { %267 = vsyncadd [#allocation3], 4294965248  ;;  %v273_v0 = vmov 64.0   ;;  %v25_v1 = vld [vmem:[#allocation2] sm:$0xff]  ;;  %v27_v2 = vld [vmem:[#allocation2 + $0x10] sm:$0xff]  ;;  %s274_s0 = smov [#allocation5]  }
   0x7   :  { %212 = vrcp.f32 %v273_v0  ;;  %v29_v3 = vld [vmem:[#allocation2 + $0x20] sm:$0xff]  ;;  %v41_v4 = vadd.f32 %v27_v2, %v25_v1  ;;  %v31_v5 = vld [vmem:[#allocation2 + $0x30] sm:$0xff]  ;;  %v26_v6 = vld [vmem:[#allocation2 + $0x8] sm:$0xff]  ;;  %s192_s13 = sshll.u32 %s274_s0, 4  ;;  %s194_s16 = sshll.u32 %s378_s1, 4  ;;  %s193_s13 = int_to_ptr.vmem [resolvable:$true] %s192_s13  ;;  %s195_s16 = int_to_ptr.hbm [resolvable:$true] %s194_s16 }
   0x8   :  { %v28_v8 = vld [vmem:[#allocation2 + $0x18] sm:$0xff]  ;;  %v30_v9 = vld [vmem:[#allocation2 + $0x28] sm:$0xff]  ;;  %v33_v10 = vld [vmem:[#allocation2 + $0x40] sm:$0xff] }
   0x9   :  { %v42_v7 = vadd.f32 %v41_v4, %v29_v3  ;;  %v54_v11 = vadd.f32 %v28_v8, %v26_v6  ;;  %v32_v14 = vld [vmem:[#allocation2 + $0x38] sm:$0xff]  ;;  %v35_v15 = vld [vmem:[#allocation2 + $0x50] sm:$0xff]  ;;  %v34_v18 = vld [vmem:[#allocation2 + $0x48] sm:$0xff] }
   0xa   :  { %v37_v19 = vld [vmem:[#allocation2 + $0x60] sm:$0xff]  ;;  %v36_v23 = vld [vmem:[#allocation2 + $0x58] sm:$0xff]  ;;  %v39_v24 = vld [vmem:[#allocation2 + $0x70] sm:$0xff] }
   0xb   :  { %v43_v13 = vadd.f32 %v42_v7, %v31_v5  ;;  %v55_v16 = vadd.f32 %v54_v11, %v30_v9  ;;  %v38_v27 = vld [vmem:[#allocation2 + $0x68] sm:$0xff]  ;;  %v40_v31 = vld [vmem:[#allocation2 + $0x78] sm:$0xff] }
   0xd   :  { %v213_v12 = vpop.eup %212  ;;  %v44_v17 = vadd.f32 %v43_v13, %v33_v10  ;;  %v56_v21 = vadd.f32 %v55_v16, %v32_v14 }
   0xe   :  { %v68_v20 = vmul.f32 64.0, %v213_v12  ;;  %vm72_vm0 = vweird.f32 %v213_v12 }
   0xf   :  { %v45_v22 = vadd.f32 %v44_v17, %v35_v15  ;;  %v57_v25 = vadd.f32 %v56_v21, %v34_v18 }
  0x10   :  { %v69_v28 = vsub.f32 1.0, %v68_v20 }
  0x11   :  { %v46_v26 = vadd.f32 %v45_v22, %v37_v19  ;;  %v58_v29 = vadd.f32 %v57_v25, %v36_v23 }
  0x12   :  { %v70_v34 = vmul.f32 %v213_v12, %v69_v28 }
  0x13   :  { %v47_v30 = vadd.f32 %v46_v26, %v39_v24  ;;  %v59_v32 = vadd.f32 %v58_v29, %v38_v27 }
  0x14   :  { %v71_v39 = vadd.f32 %v213_v12, %v70_v34 }
  0x15   :  { %v48_v33 = vrot.slane %v47_v30, 4  ;;  %v60_v35 = vadd.f32 %v59_v32, %v40_v31 }
  0x16   :  { %v73_v44 = vsel %vm72_vm0, %v213_v12, %v71_v39 }
  0x17   :  { %v49_v36 = vadd.f32 %v48_v33, %v47_v30  ;;  %v61_v37 = vrot.slane %v60_v35, 4 }
  0x19   :  { %v50_v38 = vrot.slane %v49_v36, 2  ;;  %v62_v40 = vadd.f32 %v61_v37, %v60_v35 }
  0x1b   :  { %v51_v41 = vadd.f32 %v50_v38, %v49_v36  ;;  %v63_v42 = vrot.slane %v62_v40, 2 }
  0x1d   :  { %v52_v43 = vrot.slane %v51_v41, 1  ;;  %v64_v45 = vadd.f32 %v63_v42, %v62_v40 }
  0x1f   :  { %v53_v46 = vadd.f32 %v52_v43, %v51_v41  ;;  %v65_v47 = vrot.slane %v64_v45, 1 }
  0x21   :  { %v74_v48 = vmul.f32 %v73_v44, %v53_v46  ;;  %v66_v49 = vadd.f32 %v65_v47, %v64_v45 }
  0x23   :  { %v291_v50 = vsub.f32 %v25_v1, %v74_v48  ;;  %v293_v51 = vsub.f32 %v27_v2, %v74_v48  ;;  %v295_v52 = vsub.f32 %v29_v3, %v74_v48  ;;  %v297_v53 = vsub.f32 %v31_v5, %v74_v48 }
  0x24   :  { %v299_v54 = vsub.f32 %v33_v10, %v74_v48  ;;  %v307_v58 = vsub.f32 %v35_v15, %v74_v48  ;;  %v75_v61 = vmul.f32 %v73_v44, %v66_v49  ;;  %v311_v62 = vsub.f32 %v37_v19, %v74_v48 }
  0x25   :  { %v92_v55 = vmul.f32 %v291_v50, %v291_v50  ;;  %v94_v56 = vmul.f32 %v293_v51, %v293_v51  ;;  %v96_v57 = vmul.f32 %v295_v52, %v295_v52  ;;  %v98_v59 = vmul.f32 %v297_v53, %v297_v53 }
  0x26   :  { %v100_v63 = vmul.f32 %v299_v54, %v299_v54  ;;  %v315_v1 = vsub.f32 %v26_v6, %v75_v61  ;;  %v317_v2 = vsub.f32 %v28_v8, %v75_v61  ;;  %v319_v3 = vsub.f32 %v30_v9, %v75_v61 }
  0x27   :  { %v108_v60 = vadd.f32 %v94_v56, %v92_v55  ;;  %v321_v4 = vsub.f32 %v39_v24, %v74_v48  ;;  %v102_v5 = vmul.f32 %v307_v58, %v307_v58  ;;  %v325_v7 = vsub.f32 %v32_v14, %v75_v61 }
  0x28   :  { %v327_v11 = vsub.f32 %v34_v18, %v75_v61  ;;  %v93_v12 = vmul.f32 %v315_v1, %v315_v1  ;;  %v95_v6 = vmul.f32 %v317_v2, %v317_v2  ;;  %v104_v8 = vmul.f32 %v311_v62, %v311_v62 }
  0x29   :  { %v109_v0 = vadd.f32 %v108_v60, %v96_v57  ;;  %v97_v9 = vmul.f32 %v319_v3, %v319_v3  ;;  %v337_v15 = vsub.f32 %v36_v23, %v75_v61  ;;  %v99_v14 = vmul.f32 %v325_v7, %v325_v7 }
  0x2a   :  { %v121_v16 = vadd.f32 %v95_v6, %v93_v12  ;;  %v106_v17 = vmul.f32 %v321_v4, %v321_v4  ;;  %v343_v19 = vsub.f32 %v38_v27, %v75_v61  ;;  %v101_v20 = vmul.f32 %v327_v11, %v327_v11 }
  0x2b   :  { %v110_v10 = vadd.f32 %v109_v0, %v98_v59  ;;  %v347_v24 = vsub.f32 %v40_v31, %v75_v61  ;;  %v103_v23 = vmul.f32 %v337_v15, %v337_v15 }
  0x2c   :  { %v122_v21 = vadd.f32 %v121_v16, %v97_v9  ;;  %v105_v28 = vmul.f32 %v343_v19, %v343_v19 }
  0x2d   :  { %v111_v13 = vadd.f32 %v110_v10, %v100_v63  ;;  %v107_v27 = vmul.f32 %v347_v24, %v347_v24 }
  0x2e   :  { %v123_v25 = vadd.f32 %v122_v21, %v99_v14 }
  0x2f   :  { %v112_v18 = vadd.f32 %v111_v13, %v102_v5 }
  0x30   :  { %v124_v29 = vadd.f32 %v123_v25, %v101_v20 }
  0x31   :  { %v113_v22 = vadd.f32 %v112_v18, %v104_v8 }
  0x32   :  { %v125_v32 = vadd.f32 %v124_v29, %v103_v23 }
  0x33   :  { %v114_v26 = vadd.f32 %v113_v22, %v106_v17 }
  0x34   :  { %v126_v34 = vadd.f32 %v125_v32, %v105_v28 }
  0x35   :  { %v115_v30 = vrot.slane %v114_v26, 4 }
  0x36   :  { %v127_v36 = vadd.f32 %v126_v34, %v107_v27 }
  0x37   :  { %v116_v33 = vadd.f32 %v115_v30, %v114_v26 }
  0x38   :  { %v128_v37 = vrot.slane %v127_v36, 4 }
  0x39   :  { %v117_v35 = vrot.slane %v116_v33, 2 }
  0x3a   :  { %v129_v39 = vadd.f32 %v128_v37, %v127_v36 }
  0x3b   :  { %v118_v31 = vadd.f32 %v117_v35, %v116_v33 }
  0x3c   :  { %v130_v41 = vrot.slane %v129_v39, 2 }
  0x3d   :  { %v119_v38 = vrot.slane %v118_v31, 1 }
  0x3e   :  { %v131_v43 = vadd.f32 %v130_v41, %v129_v39 }
  0x3f   :  { %v120_v40 = vadd.f32 %v119_v38, %v118_v31 }
  0x40   :  { %v132_v44 = vrot.slane %v131_v43, 1 }
  0x41   :  { %v134_v42 = vmul.f32 0.015873017, %v120_v40 }
  0x42   :  { %v133_v45 = vadd.f32 %v132_v44, %v131_v43 }
  0x43   :  { %214 = vrsqrt.f32 %v134_v42  ;;  %vm142_vm1 = vweird.f32 %v134_v42 }
  0x44   :  { %v135_v46 = vmul.f32 0.015873017, %v133_v45 }
  0x46   :  { %216 = vrsqrt.f32 %v135_v46  ;;  %vm152_vm4 = vweird.f32 %v135_v46 }
  0x49   :  { %v215_v47 = vpop.eup %214 }
  0x4a   :  { %v137_v48 = vmul.f32 %v215_v47, %v134_v42  ;;  %vm143_vm2 = vweird.f32 %v215_v47 }
  0x4b   :  { %vm144_vm3 = vmor %vm142_vm1, %vm143_vm2 }
  0x4c   :  { %v138_v49 = vmul.f32 %v215_v47, %v137_v48  ;;  %v217_v56 = vpop.eup %216 }
  0x4d   :  { %v147_v59 = vmul.f32 %v217_v56, %v135_v46  ;;  %vm153_vm5 = vweird.f32 %v217_v56 }
  0x4e   :  { %v139_v55 = vmul.f32 0.5, %v138_v49  ;;  %vm154_vm6 = vmor %vm152_vm4, %vm153_vm5 }
  0x4f   :  { %v148_v61 = vmul.f32 %v217_v56, %v147_v59 }
  0x50   :  { %v140_v57 = vsub.f32 1.5, %v139_v55 }
  0x51   :  { %v149_v0 = vmul.f32 0.5, %v148_v61 }
  0x52   :  { %v141_v60 = vmul.f32 %v215_v47, %v140_v57 }
  0x53   :  { %v150_v6 = vsub.f32 1.5, %v149_v0 }
  0x54   :  { %v145_v63 = vsel %vm144_vm3, %v215_v47, %v141_v60 }
  0x55   :  { %v156_v5 = vmul.f32 %v145_v63, %v291_v50  ;;  %v158_v10 = vmul.f32 %v145_v63, %v293_v51  ;;  %v160_v12 = vmul.f32 %v145_v63, %v295_v52  ;;  %v162_v8 = vmul.f32 %v145_v63, %v297_v53 }
  0x56   :  { %v164_v9 = vmul.f32 %v145_v63, %v299_v54  ;;  %v151_v13 = vmul.f32 %v217_v56, %v150_v6  ;;  %v166_v14 = vmul.f32 %v145_v63, %v307_v58  ;;  %v168_v58 = vmul.f32 %v145_v63, %v311_v62 }
  0x57   :  { %172 = vst [vmem:[#allocation5] sm:$0xff] %v156_v5 }
  0x58   :  { %174 = vst [vmem:[#allocation5 + $0x10] sm:$0xff] %v158_v10  ;;  %v155_v16 = vsel %vm154_vm6, %v217_v56, %v151_v13 }
  0x59   :  { %176 = vst [vmem:[#allocation5 + $0x20] sm:$0xff] %v160_v12  ;;  %v157_v50 = vmul.f32 %v155_v16, %v315_v1  ;;  %v159_v51 = vmul.f32 %v155_v16, %v317_v2  ;;  %v161_v52 = vmul.f32 %v155_v16, %v319_v3  ;;  %v163_v53 = vmul.f32 %v155_v16, %v325_v7 }
  0x5a   :  { %178 = vst [vmem:[#allocation5 + $0x30] sm:$0xff] %v162_v8  ;;  %v165_v54 = vmul.f32 %v155_v16, %v327_v11  ;;  %v167_v17 = vmul.f32 %v155_v16, %v337_v15  ;;  %v169_v1 = vmul.f32 %v155_v16, %v343_v19  ;;  %v170_v2 = vmul.f32 %v145_v63, %v321_v4 }
  0x5b   :  { %180 = vst [vmem:[#allocation5 + $0x40] sm:$0xff] %v164_v9  ;;  %v171_v3 = vmul.f32 %v155_v16, %v347_v24 }
  0x5c   :  { %182 = vst [vmem:[#allocation5 + $0x50] sm:$0xff] %v166_v14 }
  0x5d   :  { %173 = vst [vmem:[#allocation5 + $0x8] sm:$0xff] %v157_v50 }
  0x5e   :  { %175 = vst [vmem:[#allocation5 + $0x18] sm:$0xff] %v159_v51 }
  0x5f   :  { %177 = vst [vmem:[#allocation5 + $0x28] sm:$0xff] %v161_v52 }
  0x60   :  { %179 = vst [vmem:[#allocation5 + $0x38] sm:$0xff] %v163_v53 }
  0x61   :  { %181 = vst [vmem:[#allocation5 + $0x48] sm:$0xff] %v165_v54 }
  0x62   :  { %183 = vst [vmem:[#allocation5 + $0x58] sm:$0xff] %v167_v17 }
  0x63   :  { %184 = vst [vmem:[#allocation5 + $0x60] sm:$0xff] %v168_v58 }
  0x64   :  { %185 = vst [vmem:[#allocation5 + $0x68] sm:$0xff] %v169_v1 }
  0x65   :  { %186 = vst [vmem:[#allocation5 + $0x70] sm:$0xff] %v170_v2 }
  0x66   :  { %187 = vst [vmem:[#allocation5 + $0x78] sm:$0xff] %v171_v3 }
  0x67   :  { %200 = dma.vmem_to_hbm [thread:$0]  %s193_s13, 2048, %s195_s16, [#allocation4], %s271_s11, %s271_s11, %s272_s12  }
  0x68   :  { %268 = dma.done.wait [#allocation4], 2048  }
  0x69   :  { %269 = vsyncadd [#allocation4], 4294965248 }
  0x6a   :  { %205 = vsyncpa [#allocation3], 1 }
  0x6b   :  { %206 = vsyncpa [#allocation4], 1 }

</bundles_post_ra>
